<compile_context>
chip_gen: v6e
topology: v6e:2x2x1
jax: 0.10.0
libtpu: 0.0.40
codegen_flags: <defaults>
</compile_context>

<pallas_src>
import math

import jax
import jax.numpy as jnp
from jax import lax
from jax.experimental import pallas as pl
from jax.experimental.pallas import tpu as pltpu


# ---------------------------------------------------------------------------
# Kernel 1: scoring matvec.  w_hat is pre-normalized and pre-cast to the
# embedding dtype, so the MXU runs at native rate and accumulates in f32.
# ---------------------------------------------------------------------------
def score_kernel(emb_ref, w_ref, score_ref):
    score_ref[...] = jnp.dot(
        emb_ref[...],
        w_ref[...],
        preferred_element_type=jnp.float32,
    )


# ---------------------------------------------------------------------------
# Kernel 2: gather one selected row per grid step (pl.Element row gather) and
# scale it by its tanh(score) gain (scalar read from SMEM).  Output block is
# (1, 1, F) so write-back is a full, unmasked per-row DMA.
# ---------------------------------------------------------------------------
def gather_scale_kernel(idx_ref, emb_ref, gain_ref, out_ref):
    # idx_ref (SMEM, scalar-prefetch) is consumed by the index_map; unused here.
    del idx_ref
    i = pl.program_id(0)
    g = gain_ref[i]                               # scalar f32 from SMEM
    row = emb_ref[...] * g                        # (1, F), promoted to f32
    out_ref[...] = row.astype(out_ref.dtype).reshape(out_ref.shape)


def _pick_row_tile(n, f, itemsize, target_bytes=4 << 20):
    """Bytes-driven row tile: ~4 MiB of embedding data per grid step
    (double-buffered -> ~8 MiB), rounded down to a multiple of 8 rows.
    Full-array block when N is small enough (always legal)."""
    tn = max(8, ((target_bytes // max(f * itemsize, 1)) // 8) * 8)
    return n if tn >= n else tn


# Below this many output elements the plain-JAX gather beats the fixed
# pallas_call launch + per-row grid steps.
_PALLAS_GATHER_MIN_ELEMS = 4096


def topk_forward(node_embs, scorer, k):
    """Pallas implementation of TopK.forward."""
    N, F = node_embs.shape
    assert scorer.shape == (F, 1)

    # --- 0) fold the scorer norm into the weight once, then match input dtype ---
    w = scorer.astype(jnp.float32)
    w_hat = (w / jnp.sqrt(jnp.sum(w * w))).astype(node_embs.dtype)

    # --- 1) scoring matvec, tiled over N with double-buffered pipelining ---
    tn = _pick_row_tile(N, F, jnp.dtype(node_embs.dtype).itemsize)
    scores = pl.pallas_call(
        score_kernel,
        out_shape=jax.ShapeDtypeStruct((N, 1), jnp.float32),
        grid=(pl.cdiv(N, tn),),
        in_specs=[
            pl.BlockSpec((tn, F), lambda i: (i, 0)),
            pl.BlockSpec((F, 1), lambda i: (0, 0)),
        ],
        out_specs=pl.BlockSpec((tn, 1), lambda i: (i, 0)),
        compiler_params=pltpu.CompilerParams(
            dimension_semantics=("parallel",),
            vmem_limit_bytes=32 << 20,  # v5e scoped default is only 16 MiB
        ),
    )(node_embs, w_hat)

    # --- 2) top-k selection + -inf filter + pad_with_last_val (JAX glue) ---
    # TODO(synk): top-k / sort has no clean single Pallas TPU primitive; done with lax.top_k.
    vals, topk_indices = lax.top_k(scores.reshape(-1), k)
    valid = vals > -jnp.inf
    num_valid = jnp.sum(valid.astype(jnp.int32))
    pad_val = topk_indices[jnp.maximum(num_valid - 1, 0)]
    topk_indices = jnp.where(jnp.arange(k) < num_valid, topk_indices, pad_val)
    # Defensive clamp: TPU element gathers are not bounds-checked at runtime.
    topk_indices = jnp.clip(topk_indices, 0, N - 1).astype(jnp.int32)

    # tanh of the k selected scores is tiny; do it in the wrapper. (k,) f32.
    gains = jnp.tanh(jnp.take(scores.reshape(-1), topk_indices))

    # --- 3) gather + scale ---
    if k * F < _PALLAS_GATHER_MIN_ELEMS:
        # Tiny problem: XLA gather is cheaper than a pallas_call launch + k steps.
        out_kf = (jnp.take(node_embs, topk_indices, axis=0)
                  * gains[:, None]).astype(node_embs.dtype)
    else:
        # Only k rows of HBM traffic; indices scalar-prefetched, gains in SMEM,
        # per-row pipelined output blocks, grid split across cores.
        # TODO(synk): for very large k, batch B rows per step via memory_space=pl.ANY
        # + manual make_async_copy so several row-DMAs are in flight at once.
        out_k1f = pl.pallas_call(
            gather_scale_kernel,
            out_shape=jax.ShapeDtypeStruct((k, 1, F), node_embs.dtype),
            grid_spec=pltpu.PrefetchScalarGridSpec(
                num_scalar_prefetch=1,
                grid=(k,),
                in_specs=[
                    # Element-blocked row gather: fetch only node_embs[idx[i]].
                    pl.BlockSpec((pl.Element(1), F),
                                 lambda i, idx_ref: (idx_ref[i], 0)),
                    # Whole (k,) gains array resident in SMEM; scalar reads.
                    pl.BlockSpec(memory_space=pltpu.MemorySpace.SMEM),
                ],
                # One (1, 1, F) output block per step -> unmasked pipelined writeback.
                out_specs=pl.BlockSpec((1, 1, F),
                                       lambda i, idx_ref: (i, 0, 0)),
            ),
            compiler_params=pltpu.CompilerParams(
                dimension_semantics=("parallel",)),
        )(topk_indices, node_embs, gains)
        out_kf = out_k1f.reshape(k, F)

    # PyTorch returns out.t() -> (feats, k). Transpose is layout glue.
    return out_kf.T


def reference_forward(node_embs, scorer, k):
    """Pure-JAX reference mirroring the PyTorch module."""
    scores = node_embs @ scorer / jnp.linalg.norm(scorer)
    vals, idx = lax.top_k(scores.reshape(-1), k)
    out = node_embs[idx] * jnp.tanh(scores[idx].reshape(-1, 1))
    return out.T


def _make_inputs(key, n, feats):
    k_emb, k_scorer = jax.random.split(key)
    node_embs = jax.random.normal(k_emb, (n, feats), dtype=jnp.float32)
    # Deterministic init matching reset_param: uniform(-stdv, stdv), stdv = 1/sqrt(feats).
    stdv = 1.0 / math.sqrt(feats)
    scorer = jax.random.uniform(k_scorer, (feats, 1), dtype=jnp.float32,
                                minval=-stdv, maxval=stdv)
    return node_embs, scorer


if __name__ == "__main__":
    key = jax.random.PRNGKey(0)
    key1, key2 = jax.random.split(key)

    # Case 1: tiny shapes (module-sized) -> scoring kernel + plain-JAX gather path.
    N1, feats1, k1 = 64, 32, 8
    emb1, scorer1 = _make_inputs(key1, N1, feats1)
    out1 = jax.block_until_ready(topk_forward(emb1, scorer1, k1))
    ref1 = reference_forward(emb1, scorer1, k1)
    assert out1.shape == (feats1, k1), out1.shape
    assert jnp.allclose(out1, ref1, atol=1e-5, rtol=1e-5), "mismatch vs reference (case 1)"

    # Case 2: modest shapes -> scoring kernel + Pallas element-gather path.
    N2, feats2, k2 = 512, 128, 64
    emb2, scorer2 = _make_inputs(key2, N2, feats2)
    out2 = jax.block_until_ready(topk_forward(emb2, scorer2, k2))
    ref2 = reference_forward(emb2, scorer2, k2)
    assert out2.shape == (feats2, k2), out2.shape
    assert jnp.allclose(out2, ref2, atol=1e-5, rtol=1e-5), "mismatch vs reference (case 2)"

    print("KERNEL_OK")
</pallas_src>

<mosaic_0001>
module attributes {stable_mosaic.version = 11 : i64} {
  func.func @score_kernel(%arg0: i32, %arg1: memref<64x32xf32, #tpu.memory_space<vmem>>, %arg2: memref<32x1xf32, #tpu.memory_space<vmem>>, %arg3: memref<64x1xf32, #tpu.memory_space<vmem>>) attributes {dimension_semantics = [#tpu.dimension_semantics<parallel>], iteration_bounds = array<i64: 1>, scalar_prefetch = 0 : i64, scratch_operands = 0 : i64, tpu.core_type = #tpu.core_type<tc>, window_params = [{transform_indices = @transform_0, window_bounds = array<i64: 64, 32>}, {pipeline_mode = #tpu.pipeline_mode<synchronous>, transform_indices = @transform_1, window_bounds = array<i64: 32, 1>}, {transform_indices = @transform_2, window_bounds = array<i64: 64, 1>}]} {
    %c0 = arith.constant 0 : index
    %c0_0 = arith.constant 0 : index
    %0 = vector.load %arg1[%c0, %c0_0] : memref<64x32xf32, #tpu.memory_space<vmem>>, vector<64x32xf32>
    %c0_1 = arith.constant 0 : index
    %c0_2 = arith.constant 0 : index
    %1 = vector.load %arg2[%c0_1, %c0_2] : memref<32x1xf32, #tpu.memory_space<vmem>>, vector<32x1xf32>
    %cst = arith.constant dense<0.000000e+00> : vector<64x1xf32>
    %2 = tpu.matmul %0, %1, %cst {dimension_numbers = #tpu.dot_dimension_numbers<[1], [0], [0], [1], [0, 0, 1, 1], [], []>} : vector<64x32xf32>, vector<32x1xf32>, vector<64x1xf32> -> vector<64x1xf32>
    %c0_3 = arith.constant 0 : index
    %c0_4 = arith.constant 0 : index
    %3 = vector.load %arg3[%c0_3, %c0_4] : memref<64x1xf32, #tpu.memory_space<vmem>>, vector<64x1xf32>
    tpu.vector_store %arg3[%c0_3, %c0_4], %2 {strides = array<i32>} : memref<64x1xf32, #tpu.memory_space<vmem>>, vector<64x1xf32>,
    return
  }
  func.func @transform_0(%arg0: i32) -> (i32, i32) {
    %c0_i32 = arith.constant 0 : i32
    %c0_i32_0 = arith.constant 0 : i32
    return %arg0, %c0_i32 : i32, i32
  }
  func.func @transform_1(%arg0: i32) -> (i32, i32) {
    %c0_i32 = arith.constant 0 : i32
    %c0_i32_0 = arith.constant 0 : i32
    %c0_i32_1 = arith.constant 0 : i32
    return %c0_i32, %c0_i32_0 : i32, i32
  }
  func.func @transform_2(%arg0: i32) -> (i32, i32) {
    %c0_i32 = arith.constant 0 : i32
    %c0_i32_0 = arith.constant 0 : i32
    return %arg0, %c0_i32 : i32, i32
  }
}

</mosaic_0001>

<bundles_post_ra>
// kernel: tpu_custom_call.1
= control target key start
LH: loop header
LB: loop body
LE: loop exit
PB: predicated region body
PF: predicated region fallthrough
CT: control target
= control target key end

     0   :  { %vm23_vm0 = vcmask 261120   ;;  %vm153_vm1 = vcmask 7168   ;;  %s305_s1 = inlined_call_operand.vmem [shape: f32[32,1], index: 1, kind: input, shape index: {}]   ;;  %s306_s0 = inlined_call_operand.vmem [shape: f32[64,32], index: 0, kind: input, shape index: {}]   ;;  %s307_s2 = inlined_call_operand.vmem [shape: f32[64,1], index: 2, kind: output, shape index: {}]  }
   0x1   :  { %v22_v0 = vld [vmem:[%s305_s1 + $0x18] sm:$0xff]  ;;  %v21_v1 = vld [vmem:[%s305_s1 + $0x10] sm:$0xff]  ;;  %v20_v2 = vld [vmem:[%s305_s1 + $0x8] sm:$0xff] }
   0x2   :  { %186 = vmatprep.subr.mxu0 %v22_v0  ;;  %206 = vmatprep.subr.mxu1 %v22_v0  ;;  %v19_v3 = vld [vmem:[%s305_s1] sm:$0xff]  ;;  %v12_v6 = vld [vmem:[%s306_s0 + $0x8] sm:$0xff]  ;;  %v13_v8 = vld [vmem:[%s306_s0 + $0x10] sm:$0xff] }
   0x3   :  { %187 = vmatpush3.msra.mxu0 %v22_v0  ;;  %210 = vmatpush3.msra.mxu1 %v22_v0  ;;  %v11_v4 = vld [vmem:[%s306_s0] sm:$0xff]  ;;  %v16_v7 = vld [vmem:[%s306_s0 + $0x28] sm:$0xff]  ;;  %v17_v9 = vld [vmem:[%s306_s0 + $0x30] sm:$0xff] }
   0x4   :  { %188 = vmatprep.subr.mxu0 %v21_v1  ;;  %207 = vmatprep.subr.mxu1 %v21_v1  ;;  %v15_v5 = vld [vmem:[%s306_s0 + $0x20] sm:$0xff]  ;;  %v14_v10 = vld [vmem:[%s306_s0 + $0x18] sm:$0xff] }
   0x5   :  { %189 = vmatpush3.msra.mxu0 %v21_v1  ;;  %211 = vmatpush3.msra.mxu1 %v21_v1  ;;  %v18_v11 = vld [vmem:[%s306_s0 + $0x38] sm:$0xff] }
   0x6   :  { %190 = vmatprep.subr.mxu0 %v20_v2  ;;  %208 = vmatprep.subr.mxu1 %v20_v2 }
   0x7   :  { %191 = vmatpush3.msra.mxu0 %v20_v2  ;;  %212 = vmatpush3.msra.mxu1 %v20_v2 }
   0x8   :  { %192 = vmatprep.subr.mxu0 %v19_v3  ;;  %209 = vmatprep.subr.mxu1 %v19_v3 }
   0x9   :  { %193 = vmatpush3.msra.mxu0 %v19_v3  ;;  %213 = vmatpush3.msra.mxu1 %v19_v3 }
   0xa   :  { %194 = vmatprep.mubr.msk.f32.mxu0 %vm23_vm0, %v11_v4  ;;  %200 = vmatprep.mubr.msk.f32.mxu1 %vm23_vm0, %v15_v5 }
   0xb   :  { %195 = vmatmul.mubr.msk.f32.vlgmr.msra.gmra.mxu0 %vm23_vm0, %v12_v6  ;;  %201 = vmatmul.mubr.msk.f32.vlgmr.msra.gmra.mxu1 %vm23_vm0, %v16_v7 }
   0xc   :  { %197 = vmatprep.mubr.msk.f32.mxu0 %vm23_vm0, %v13_v8  ;;  %203 = vmatprep.mubr.msk.f32.mxu1 %vm23_vm0, %v17_v9 }
   0xf   :  { %198 = vmatmul.mubr.msk.f32.gmra.mxu0 %vm23_vm0, %v14_v10  ;;  %204 = vmatmul.mubr.msk.f32.gmra.mxu1 %vm23_vm0, %v18_v11 }
  0xcb   :  { %v196_v12 = vpop.f32.mrf.mxu0  ;;  %v202_v13 = vpop.f32.mrf.mxu1 }
  0xcc   :  { %155 = vst.msk [vmem:[%s307_s2 + $0x8] sm:$0xff] %vm153_vm1, %v196_v12  ;;  %159 = vst.msk [vmem:[%s307_s2 + $0x28] sm:$0xff] %vm153_vm1, %v202_v13 }
  0xcd   :  { %v114_v14 = vpop.f32.mrf.mxu0  ;;  %v134_v15 = vpop.f32.mrf.mxu1 }
  0xce   :  { %154 = vst.msk [vmem:[%s307_s2] sm:$0xff] %vm153_vm1, %v114_v14  ;;  %158 = vst.msk [vmem:[%s307_s2 + $0x20] sm:$0xff] %vm153_vm1, %v134_v15 }
  0xcf   :  { %v199_v16 = vpop.f32.mrf.mxu0  ;;  %v205_v17 = vpop.f32.mrf.mxu1 }
  0xd0   :  { %157 = vst.msk [vmem:[%s307_s2 + $0x18] sm:$0xff] %vm153_vm1, %v199_v16  ;;  %161 = vst.msk [vmem:[%s307_s2 + $0x38] sm:$0xff] %vm153_vm1, %v205_v17 }
  0xd1   :  { %v124_v18 = vpop.f32.mrf.mxu0  ;;  %v144_v19 = vpop.f32.mrf.mxu1 }
  0xd2   :  { %156 = vst.msk [vmem:[%s307_s2 + $0x10] sm:$0xff] %vm153_vm1, %v124_v18  ;;  %160 = vst.msk [vmem:[%s307_s2 + $0x30] sm:$0xff] %vm153_vm1, %v144_v19 }

</bundles_post_ra>
